<compile_context>
chip_gen: v6e
topology: v6e:2x2x1
jax: 0.10.0
libtpu: 0.0.40
codegen_flags: <defaults>
</compile_context>

<pallas_src>
import jax
import jax.numpy as jnp
from jax.experimental import pallas as pl
from jax.experimental.pallas import tpu as pltpu

EPS = 1e-3  # BatchNorm2d eps=0.001


def bn_conv1x1_kernel(gb_ref, w_ref, x_ref, o_ref):
    # gb_ref: (C_in, 2)        packed BN params: [:,0]=gamma, [:,1]=beta
    # w_ref:  (C_out, C_in)    1x1 conv weight in its native orientation
    # x_ref:  (N, C_in, L)     L = H*W; channels on sublanes, spatial on lanes
    # o_ref:  (N, C_out, L)
    N, C_in, L = x_ref.shape
    inv_n = 1.0 / (N * L)  # static trip count

    # Load each (C_in, L) slab once; reuse for stats and the folded BN+matmul pass.
    slabs = [x_ref[n] for n in range(N)]

    # One-pass per-channel batch statistics over (N, H, W).
    s1 = jnp.zeros((C_in, 1), jnp.float32)
    s2 = jnp.zeros((C_in, 1), jnp.float32)
    for xs in slabs:
        s1 = s1 + jnp.sum(xs, axis=1, keepdims=True)
        s2 = s2 + jnp.sum(xs * xs, axis=1, keepdims=True)
    mean = s1 * inv_n
    var = jnp.maximum(s2 * inv_n - mean * mean, 0.0)  # biased variance, clamped >= 0

    gamma = gb_ref[:, 0:1]  # (C_in, 1)
    beta = gb_ref[:, 1:2]   # (C_in, 1)
    scale = gamma * jax.lax.rsqrt(var + EPS)  # rsqrt -> EUP slot
    shift = beta - mean * scale

    # BN folded to a single scale/shift FMA pass, then 1x1 conv on the MXU:
    # (C_out, C_in) @ (C_in, L) per batch slab, all VMEM-resident.
    w = w_ref[...]
    for n in range(N):
        xn = slabs[n] * scale + shift
        o_ref[n] = jnp.dot(w, xn, preferred_element_type=jnp.float32).astype(o_ref.dtype)


@jax.jit
def batchnorm_conv1x1(x_nchw, gamma, beta, conv_w):
    """x_nchw: (N, C_in, H, W); gamma/beta: (C_in,); conv_w: (C_out, C_in, 1, 1)."""
    N, C_in, H, W = x_nchw.shape
    C_out = conv_w.shape[0]
    L = H * W

    x3d = x_nchw.reshape(N, C_in, L)          # pure metadata reshape (any N)
    w_mat = conv_w.reshape(C_out, C_in)       # native orientation, no transpose
    gb = jnp.stack([gamma, beta], axis=1)     # (C_in, 2) packed BN params

    # Advisory cost hint for XLA's scheduler around the custom call.
    flops = 2 * C_out * C_in * N * L + 6 * C_in * N * L
    bytes_accessed = 4 * (N * C_in * L + C_out * C_in + 2 * C_in + N * C_out * L)
    cost = pl.CostEstimate(
        flops=flops, transcendentals=C_in, bytes_accessed=bytes_accessed
    )

    # Whole-problem single block (~0.3 MiB total): gridless call, every operand
    # pinned whole-array-resident in VMEM. If N*H*W ever grows to a few MiB,
    # switch to a two-pass tiled plan (stats, then folded matmul) with row-tiled
    # BlockSpecs, "parallel" semantics, and tiles sized for v7x's 64 MiB VMEM.
    vmem_spec = pl.BlockSpec(memory_space=pltpu.MemorySpace.VMEM)
    out3d = pl.pallas_call(
        bn_conv1x1_kernel,
        out_shape=jax.ShapeDtypeStruct((N, C_out, L), x_nchw.dtype),
        in_specs=[vmem_spec, vmem_spec, vmem_spec],
        out_specs=vmem_spec,
        cost_estimate=cost,
    )(gb, w_mat, x3d)

    return out3d.reshape(N, C_out, H, W)      # pure metadata reshape (any N)


if __name__ == "__main__":
    # Shapes implied by the module: x79 = (1, 80, 14, 14), Conv2d 80 -> 200, 1x1.
    N, C_IN, H, W = 1, 80, 14, 14
    C_OUT = 200

    key = jax.random.PRNGKey(0)
    k_x, k_g, k_b, k_w = jax.random.split(key, 4)

    x = jax.random.normal(k_x, (N, C_IN, H, W), dtype=jnp.float32)
    gamma = 1.0 + 0.1 * jax.random.normal(k_g, (C_IN,), dtype=jnp.float32)
    beta = 0.1 * jax.random.normal(k_b, (C_IN,), dtype=jnp.float32)
    conv_w = jax.random.normal(k_w, (C_OUT, C_IN, 1, 1), dtype=jnp.float32) * (
        1.0 / jnp.sqrt(C_IN)
    )

    out = batchnorm_conv1x1(x, gamma, beta, conv_w)
    jax.block_until_ready(out)

    # Pure-JAX reference (training-mode BN with biased batch variance + 1x1 conv).
    mean = jnp.mean(x, axis=(0, 2, 3), keepdims=True)
    var = jnp.mean((x - mean) ** 2, axis=(0, 2, 3), keepdims=True)
    xn = (x - mean) / jnp.sqrt(var + EPS) * gamma.reshape(1, C_IN, 1, 1) + beta.reshape(
        1, C_IN, 1, 1
    )
    ref = jnp.einsum("nchw,oc->nohw", xn, conv_w.reshape(C_OUT, C_IN))

    assert out.shape == (N, C_OUT, H, W), out.shape
    assert jnp.allclose(out, ref, atol=1e-3, rtol=1e-3), float(
        jnp.max(jnp.abs(out - ref))
    )
    # TODO(synk): PyTorch training-mode BN also updates running_mean/running_var
    # buffers; that side effect does not affect the returned tensor and is not modeled.
    print("KERNEL_OK")
</pallas_src>

<mosaic_0001>
module attributes {stable_mosaic.version = 11 : i64} {
  func.func @bn_conv1x1_kernel(%arg0: memref<80x2xf32, #tpu.memory_space<vmem>>, %arg1: memref<200x80xf32, #tpu.memory_space<vmem>>, %arg2: memref<1x80x196xf32, #tpu.memory_space<vmem>>, %arg3: memref<1x200x196xf32, #tpu.memory_space<vmem>>) attributes {dimension_semantics = [], scalar_prefetch = 0 : i64, scratch_operands = 0 : i64, tpu.core_type = #tpu.core_type<tc>} {
    %c0 = arith.constant 0 : index
    %c0_0 = arith.constant 0 : index
    %c0_1 = arith.constant 0 : index
    %0 = vector.load %arg2[%c0, %c0_0, %c0_1] : memref<1x80x196xf32, #tpu.memory_space<vmem>>, vector<1x80x196xf32>
    %1 = vector.shape_cast %0 : vector<1x80x196xf32> to vector<80x196xf32>
    %cst = arith.constant 0.000000e+00 : f32
    %2 = vector.broadcast %cst : f32 to vector<80x1xf32>
    %cst_2 = arith.constant 0.000000e+00 : f32
    %3 = vector.broadcast %cst_2 : f32 to vector<80x1xf32>
    %cst_3 = arith.constant dense<0.000000e+00> : vector<80xf32>
    %4 = vector.multi_reduction <add>, %1, %cst_3 [1] : vector<80x196xf32> to vector<80xf32>
    %5 = vector.shape_cast %4 : vector<80xf32> to vector<80x1xf32>
    %6 = arith.addf %2, %5 : vector<80x1xf32>
    %7 = arith.mulf %1, %1 : vector<80x196xf32>
    %cst_4 = arith.constant dense<0.000000e+00> : vector<80xf32>
    %8 = vector.multi_reduction <add>, %7, %cst_4 [1] : vector<80x196xf32> to vector<80xf32>
    %9 = vector.shape_cast %8 : vector<80xf32> to vector<80x1xf32>
    %10 = arith.addf %3, %9 : vector<80x1xf32>
    %cst_5 = arith.constant 0.00510204071 : f32
    %11 = vector.broadcast %cst_5 : f32 to vector<80x1xf32>
    %12 = arith.mulf %6, %11 : vector<80x1xf32>
    %cst_6 = arith.constant 0.00510204071 : f32
    %13 = vector.broadcast %cst_6 : f32 to vector<80x1xf32>
    %14 = arith.mulf %10, %13 : vector<80x1xf32>
    %15 = arith.mulf %12, %12 : vector<80x1xf32>
    %16 = arith.subf %14, %15 : vector<80x1xf32>
    %cst_7 = arith.constant 0.000000e+00 : f32
    %17 = vector.broadcast %cst_7 : f32 to vector<80x1xf32>
    %18 = arith.maximumf %16, %17 : vector<80x1xf32>
    %c0_8 = arith.constant 0 : index
    %c0_9 = arith.constant 0 : index
    %19 = vector.load %arg0[%c0_8, %c0_9] : memref<80x2xf32, #tpu.memory_space<vmem>>, vector<80x1xf32>
    %c0_10 = arith.constant 0 : index
    %c1 = arith.constant 1 : index
    %20 = vector.load %arg0[%c0_10, %c1] : memref<80x2xf32, #tpu.memory_space<vmem>>, vector<80x1xf32>
    %cst_11 = arith.constant 1.000000e-03 : f32
    %21 = vector.broadcast %cst_11 : f32 to vector<80x1xf32>
    %22 = arith.addf %18, %21 : vector<80x1xf32>
    %23 = math.rsqrt %22 : vector<80x1xf32>
    %24 = arith.mulf %19, %23 : vector<80x1xf32>
    %25 = arith.mulf %12, %24 : vector<80x1xf32>
    %26 = arith.subf %20, %25 : vector<80x1xf32>
    %c0_12 = arith.constant 0 : index
    %c0_13 = arith.constant 0 : index
    %27 = vector.load %arg1[%c0_12, %c0_13] : memref<200x80xf32, #tpu.memory_space<vmem>>, vector<200x80xf32>
    %28 = vector.broadcast %24 : vector<80x1xf32> to vector<80x196xf32>
    %29 = arith.mulf %1, %28 : vector<80x196xf32>
    %30 = vector.broadcast %26 : vector<80x1xf32> to vector<80x196xf32>
    %31 = arith.addf %29, %30 : vector<80x196xf32>
    %cst_14 = arith.constant dense<0.000000e+00> : vector<200x196xf32>
    %32 = tpu.matmul %27, %31, %cst_14 {dimension_numbers = #tpu.dot_dimension_numbers<[1], [0], [0], [1], [0, 0, 1, 1], [], []>} : vector<200x80xf32>, vector<80x196xf32>, vector<200x196xf32> -> vector<200x196xf32>
    %c0_15 = arith.constant 0 : index
    %c0_16 = arith.constant 0 : index
    %c0_17 = arith.constant 0 : index
    %33 = vector.load %arg3[%c0_15, %c0_16, %c0_17] : memref<1x200x196xf32, #tpu.memory_space<vmem>>, vector<1x200x196xf32>
    %34 = vector.shape_cast %33 : vector<1x200x196xf32> to vector<200x196xf32>
    %35 = vector.shape_cast %32 : vector<200x196xf32> to vector<1x200x196xf32>
    tpu.vector_store %arg3[%c0_15, %c0_16, %c0_17], %35 {strides = array<i32>} : memref<1x200x196xf32, #tpu.memory_space<vmem>>, vector<1x200x196xf32>,
    return
  }
}

</mosaic_0001>

<bundles_post_ra>
// kernel: batchnorm_conv1x1.1
= control target key start
LH: loop header
LB: loop body
LE: loop exit
PB: predicated region body
PF: predicated region fallthrough
CT: control target
= control target key end

     0   :  { %vm34_vm0 = vcmask 556032   ;;  %s889_s28 = smov 1   ;;  %vm470_vm1 = vcmask 654336   ;;  %s1525_s2 = inlined_call_operand.vmem [shape: f32[1,80,196], index: 2, kind: input, shape index: {}]   ;;  %s1526_s0 = inlined_call_operand.vmem [shape: f32[80,2], index: 0, kind: input, shape index: {}]   ;;  %s1527_s1 = inlined_call_operand.vmem [shape: f32[200,80], index: 1, kind: input, shape index: {}]   ;;  %s1528_s3 = inlined_call_operand.vmem [shape: f32[1,200,196], index: 3, kind: output, shape index: {}]  }
   0x1   :  { %v915_v0 = vld [vmem:[%s1525_s2 + $0x90] sm:$0xff]  ;;  %v920_v1 = vld [vmem:[%s1525_s2 + $0x98] sm:$0xff]  ;;  %v937_v5 = vld [vmem:[%s1525_s2 + $0x80] sm:$0xff] }
   0x2   :  { %v925_v2 = vld [vmem:[%s1525_s2 + $0x70] sm:$0xff]  ;;  %v71_v3 = vsel %vm34_vm0, %v920_v1, 0.0  ;;  %v932_v4 = vld [vmem:[%s1525_s2 + $0x78] sm:$0xff]  ;;  %v942_v6 = vld [vmem:[%s1525_s2 + $0x88] sm:$0xff]  ;;  %v103_v7 = vmul.f32 %v915_v0, %v915_v0  ;;  %v104_v8 = vmul.f32 %v920_v1, %v920_v1  ;;  %v101_v17 = vmul.f32 %v937_v5, %v937_v5 }
   0x3   :  { %v72_v9 = vadd.f32 %v71_v3, %v915_v0  ;;  %v63_v10 = vsel %vm34_vm0, %v932_v4, 0.0  ;;  %v67_v11 = vsel %vm34_vm0, %v942_v6, 0.0  ;;  %v102_v14 = vmul.f32 %v942_v6, %v942_v6  ;;  %v960_v15 = vld [vmem:[%s1525_s2 + $0x68] sm:$0xff]  ;;  %v971_v21 = vld [vmem:[%s1525_s2 + $0x60] sm:$0xff]  ;;  %v978_v23 = vld [vmem:[%s1525_s2 + $0x58] sm:$0xff] }
   0x4   :  { %v64_v12 = vadd.f32 %v63_v10, %v925_v2  ;;  %v141_v13 = vsel %vm34_vm0, %v104_v8, 0.0  ;;  %v68_v16 = vadd.f32 %v67_v11, %v937_v5  ;;  %v100_v20 = vmul.f32 %v932_v4, %v932_v4  ;;  %v989_v29 = vld [vmem:[%s1525_s2 + $0x50] sm:$0xff]  ;;  %v996_v31 = vld [vmem:[%s1525_s2 + $0x48] sm:$0xff]  ;;  %v1007_v37 = vld [vmem:[%s1525_s2 + $0x40] sm:$0xff] }
   0x5   :  { %73 = vadd.xlane.f32.xlu0 %v72_v9  ;;  %v142_v18 = vadd.f32 %v141_v13, %v103_v7  ;;  %v137_v19 = vsel %vm34_vm0, %v102_v14, 0.0  ;;  %v59_v22 = vsel %vm34_vm0, %v960_v15, 0.0  ;;  %v99_v25 = vmul.f32 %v925_v2, %v925_v2  ;;  %v1014_v39 = vld [vmem:[%s1525_s2 + $0x38] sm:$0xff]  ;;  %v1025_v45 = vld [vmem:[%s1525_s2 + $0x30] sm:$0xff]  ;;  %v1032_v47 = vld [vmem:[%s1525_s2 + $0x28] sm:$0xff] }
   0x6   :  { %65 = vadd.xlane.f32.xlu1 %v64_v12  ;;  %v138_v24 = vadd.f32 %v137_v19, %v101_v17  ;;  %v60_v26 = vadd.f32 %v59_v22, %v971_v21  ;;  %v133_v27 = vsel %vm34_vm0, %v100_v20, 0.0  ;;  %v98_v28 = vmul.f32 %v960_v15, %v960_v15  ;;  %v1043_v53 = vld [vmem:[%s1525_s2 + $0x20] sm:$0xff]  ;;  %v1050_v55 = vld [vmem:[%s1525_s2 + $0x18] sm:$0xff]  ;;  %v1061_v61 = vld [vmem:[%s1525_s2 + $0x10] sm:$0xff] }
   0x7   :  { %v55_v30 = vsel %vm34_vm0, %v978_v23, 0.0  ;;  %v134_v32 = vadd.f32 %v133_v27, %v99_v25  ;;  %v97_v33 = vmul.f32 %v971_v21, %v971_v21  ;;  %v96_v36 = vmul.f32 %v978_v23, %v978_v23  ;;  %v1068_v63 = vld [vmem:[%s1525_s2 + $0x8] sm:$0xff]  ;;  %v1079_v11 = vld [vmem:[%s1525_s2] sm:$0xff] }
   0x8   :  { %v56_v34 = vadd.f32 %v55_v30, %v989_v29  ;;  %v129_v35 = vsel %vm34_vm0, %v98_v28, 0.0  ;;  %v51_v38 = vsel %vm34_vm0, %v996_v31, 0.0  ;;  %v95_v41 = vmul.f32 %v989_v29, %v989_v29 }
   0x9   :  { %69 = vadd.xlane.f32.xlu0 %v68_v16  ;;  %v130_v40 = vadd.f32 %v129_v35, %v97_v33  ;;  %v52_v42 = vadd.f32 %v51_v38, %v1007_v37  ;;  %v125_v43 = vsel %vm34_vm0, %v96_v36, 0.0  ;;  %v94_v44 = vmul.f32 %v996_v31, %v996_v31 }
   0xa   :  { %143 = vadd.xlane.f32.xlu1 %v142_v18  ;;  %v47_v46 = vsel %vm34_vm0, %v1014_v39, 0.0  ;;  %v126_v48 = vadd.f32 %v125_v43, %v95_v41  ;;  %v93_v49 = vmul.f32 %v1007_v37, %v1007_v37  ;;  %v92_v52 = vmul.f32 %v1014_v39, %v1014_v39 }
   0xb   :  { %v48_v50 = vadd.f32 %v47_v46, %v1025_v45  ;;  %v121_v51 = vsel %vm34_vm0, %v94_v44, 0.0  ;;  %v43_v54 = vsel %vm34_vm0, %v1032_v47, 0.0  ;;  %v91_v57 = vmul.f32 %v1025_v45, %v1025_v45 }
   0xc   :  { %v122_v56 = vadd.f32 %v121_v51, %v93_v49  ;;  %v44_v58 = vadd.f32 %v43_v54, %v1043_v53  ;;  %v117_v59 = vsel %vm34_vm0, %v92_v52, 0.0  ;;  %v90_v60 = vmul.f32 %v1032_v47, %v1032_v47 }
   0xd   :  { %139 = vadd.xlane.f32.xlu0 %v138_v24  ;;  %v39_v62 = vsel %vm34_vm0, %v1050_v55, 0.0  ;;  %v118_v3 = vadd.f32 %v117_v59, %v91_v57  ;;  %v89_v7 = vmul.f32 %v1043_v53, %v1043_v53  ;;  %v88_v10 = vmul.f32 %v1050_v55, %v1050_v55 }
   0xe   :  { %61 = vadd.xlane.f32.xlu1 %v60_v26  ;;  %v40_v8 = vadd.f32 %v39_v62, %v1061_v61  ;;  %v113_v9 = vsel %vm34_vm0, %v90_v60, 0.0  ;;  %v35_v12 = vsel %vm34_vm0, %v1068_v63, 0.0  ;;  %v86_v13 = vmul.f32 %v1068_v63, %v1068_v63 }
   0xf   :  { %v114_v14 = vadd.f32 %v113_v9, %v89_v7  ;;  %v87_v16 = vmul.f32 %v1061_v61, %v1061_v61  ;;  %v36_v17 = vadd.f32 %v35_v12, %v1079_v11  ;;  %v109_v18 = vsel %vm34_vm0, %v88_v10, 0.0 }
  0x10   :  { %v85_v19 = vmul.f32 %v1079_v11, %v1079_v11  ;;  %v105_v20 = vsel %vm34_vm0, %v86_v13, 0.0  ;;  %v888_v25 = vmov 0  }
  0x11   :  { %135 = vadd.xlane.f32.xlu0 %v134_v32  ;;  %v110_v22 = vadd.f32 %v109_v18, %v87_v16  ;;  %865 = vset.pattern.permute.xlu1 %v888_v25 }
  0x12   :  { %57 = vadd.xlane.f32.xlu1 %v56_v34  ;;  %v106_v24 = vadd.f32 %v105_v20, %v85_v19  ;;  %864 = vset.pattern.permute.xlu0 %v888_v25 }
  0x15   :  { %131 = vadd.xlane.f32.xlu0 %v130_v40 }
  0x16   :  { %53 = vadd.xlane.f32.xlu1 %v52_v42 }
  0x19   :  { %127 = vadd.xlane.f32.xlu0 %v126_v48 }
  0x1a   :  { %49 = vadd.xlane.f32.xlu1 %v48_v50 }
  0x1d   :  { %123 = vadd.xlane.f32.xlu0 %v122_v56 }
  0x1e   :  { %45 = vadd.xlane.f32.xlu1 %v44_v58 }
  0x21   :  { %119 = vadd.xlane.f32.xlu0 %v118_v3 }
  0x22   :  { %41 = vadd.xlane.f32.xlu1 %v40_v8 }
  0x25   :  { %115 = vadd.xlane.f32.xlu0 %v114_v14 }
  0x26   :  { %37 = vadd.xlane.f32.xlu1 %v36_v17 }
  0x29   :  { %111 = vadd.xlane.f32.xlu0 %v110_v22 }
  0x2a   :  { %107 = vadd.xlane.f32.xlu1 %v106_v24 }
  0x8e   :  { %v74_v26 = vpop.xlane.xlu0 %73 }
  0x8f   :  { %v66_v27 = vpop.xlane.xlu1 %65  ;;  %v1092_v28 = vmul.f32 0.0051020407, %v74_v26 }
  0x90   :  { %v1098_v40 = vmul.f32 0.0051020407, %v66_v27 }
  0x91   :  { %v184_v34 = vmul.f32 %v1092_v28, %v1092_v28 }
  0x92   :  { %v70_v30 = vpop.xlane.xlu0 %69  ;;  %v182_v51 = vmul.f32 %v1098_v40, %v1098_v40 }
  0x93   :  { %v1094_v32 = vmul.f32 0.0051020407, %v70_v30  ;;  %v144_v33 = vpop.xlane.xlu1 %143 }
  0x94   :  { %v174_v35 = vmul.f32 0.0051020407, %v144_v33  ;;  %v1121_v33 = vld [vmem:[%s1526_s0 + $0x48] sm:$0xff] }
  0x95   :  { %v183_v41 = vmul.f32 %v1094_v32, %v1094_v32 }
  0x96   :  { %v194_v36 = vsub.f32 %v174_v35, %v184_v34  ;;  %v140_v38 = vpop.xlane.xlu0 %139 }
  0x97   :  { %v173_v42 = vmul.f32 0.0051020407, %v140_v38  ;;  %v62_v43 = vpop.xlane.xlu1 %61 }
  0x98   :  { %v204_v44 = vmax.f32 %v194_v36, 0.0  ;;  %v1102_v49 = vmul.f32 0.0051020407, %v62_v43  ;;  %v1131_v43 = vld [vmem:[%s1526_s0 + $0x40] sm:$0xff] }
  0x99   :  { %v193_v46 = vsub.f32 %v173_v42, %v183_v41 }
  0x9a   :  { %v224_v48 = vadd.f32 0.001, %v204_v44  ;;  %v136_v50 = vpop.xlane.xlu0 %135  ;;  %v181_v59 = vmul.f32 %v1102_v49, %v1102_v49 }
  0x9b   :  { %v203_v52 = vmax.f32 %v193_v46, 0.0  ;;  %v172_v54 = vmul.f32 0.0051020407, %v136_v50  ;;  %v58_v56 = vpop.xlane.xlu1 %57 }
  0x9c   :  { %868 = vrsqrt.f32 %v224_v48  ;;  %v1108_v3 = vmul.f32 0.0051020407, %v58_v56 }
  0x9d   :  { %v223_v57 = vadd.f32 0.001, %v203_v52  ;;  %v192_v58 = vsub.f32 %v172_v54, %v182_v51 }
  0x9e   :  { %v132_v60 = vpop.xlane.xlu0 %131  ;;  %v180_v14 = vmul.f32 %v1108_v3, %v1108_v3 }
  0x9f   :  { %870 = vrsqrt.f32 %v223_v57  ;;  %v202_v62 = vmax.f32 %v192_v58, 0.0  ;;  %v171_v7 = vmul.f32 0.0051020407, %v132_v60  ;;  %v54_v8 = vpop.xlane.xlu1 %53 }
  0xa0   :  { %v1110_v12 = vmul.f32 0.0051020407, %v54_v8 }
  0xa1   :  { %v222_v9 = vadd.f32 0.001, %v202_v62  ;;  %v191_v10 = vsub.f32 %v171_v7, %v181_v59  ;;  %v1148_v62 = vld [vmem:[%s1526_s0 + $0x38] sm:$0xff] }
  0xa2   :  { %v128_v13 = vpop.xlane.xlu0 %127  ;;  %v179_v22 = vmul.f32 %v1110_v12, %v1110_v12 }
  0xa3   :  { %872 = vrsqrt.f32 %v222_v9  ;;  %v201_v16 = vmax.f32 %v191_v10, 0.0  ;;  %v170_v17 = vmul.f32 0.0051020407, %v128_v13  ;;  %v50_v18 = vpop.xlane.xlu1 %49 }
  0xa4   :  { %v1116_v26 = vmul.f32 0.0051020407, %v50_v18 }
  0xa5   :  { %v221_v19 = vadd.f32 0.001, %v201_v16  ;;  %v190_v20 = vsub.f32 %v170_v17, %v180_v14 }
  0xa6   :  { %v124_v24 = vpop.xlane.xlu0 %123  ;;  %v178_v44 = vmul.f32 %v1116_v26, %v1116_v26 }
  0xa7   :  { %874 = vrsqrt.f32 %v221_v19  ;;  %v200_v25 = vmax.f32 %v190_v20, 0.0  ;;  %v169_v27 = vmul.f32 0.0051020407, %v124_v24  ;;  %v46_v30 = vpop.xlane.xlu1 %45 }
  0xa8   :  { %v1123_v38 = vmul.f32 0.0051020407, %v46_v30 }
  0xa9   :  { %v869_v34 = vpop.eup %868  ;;  %v220_v35 = vadd.f32 0.001, %v200_v25  ;;  %v189_v36 = vsub.f32 %v169_v27, %v179_v22  ;;  %v1159_v22 = vld [vmem:[%s1526_s0 + $0x30] sm:$0xff] }
  0xaa   :  { %v120_v41 = vpop.xlane.xlu0 %119  ;;  %v1126_v42 = vmul.f32 %v869_v34, %v1121_v33  ;;  %v177_v58 = vmul.f32 %v1123_v38, %v1123_v38 }
  0xab   :  { %876 = vrsqrt.f32 %v220_v35  ;;  %v199_v46 = vmax.f32 %v189_v36, 0.0  ;;  %v168_v48 = vmul.f32 0.0051020407, %v120_v41  ;;  %v42_v50 = vpop.xlane.xlu1 %41 }
  0xac   :  { %v871_v51 = vpop.eup %870  ;;  %v254_v52 = vmul.f32 %v1126_v42, %v1092_v28  ;;  %v1142_v59 = vmul.f32 0.0051020407, %v42_v50 }
  0xad   :  { %v219_v54 = vadd.f32 0.001, %v199_v46  ;;  %v188_v56 = vsub.f32 %v168_v48, %v178_v44  ;;  %v1138_v57 = vmul.f32 %v871_v51, %v1131_v43  ;;  %v1167_v46 = vld [vmem:[%s1526_s0 + $0x28] sm:$0xff] }
  0xae   :  { %283 = vrot.lane.b32.xlu0 %v254_v52, %s889_s28  ;;  %v116_v60 = vpop.xlane.xlu0 %115  ;;  %v176_v18 = vmul.f32 %v1142_v59, %v1142_v59 }
  0xaf   :  { %878 = vrsqrt.f32 %v219_v54  ;;  %v198_v28 = vmax.f32 %v188_v56, 0.0  ;;  %v167_v7 = vmul.f32 0.0051020407, %v116_v60  ;;  %v38_v8 = vpop.xlane.xlu1 %37  ;;  %v253_v9 = vmul.f32 %v1138_v57, %v1094_v32 }
  0xb0   :  { %v873_v10 = vpop.eup %872  ;;  %v155_v13 = vmul.f32 0.0051020407, %v38_v8 }
  0xb1   :  { %v218_v14 = vadd.f32 0.001, %v198_v28  ;;  %v187_v16 = vsub.f32 %v167_v7, %v177_v58  ;;  %281 = vrot.lane.b32.xlu1 %v253_v9, %s889_s28  ;;  %v242_v17 = vmul.f32 %v873_v10, %v1148_v62  ;;  %v209_v58 = vld [vmem:[%s1526_s0 + $0x20] sm:$0xff]  ;;  %v208_v7 = vld [vmem:[%s1526_s0 + $0x18] sm:$0xff] }
  0xb2   :  { %v175_v19 = vmul.f32 %v155_v13, %v155_v13  ;;  %v112_v20 = vpop.xlane.xlu0 %111 }
  0xb3   :  { %880 = vrsqrt.f32 %v218_v14  ;;  %v197_v32 = vmax.f32 %v187_v16, 0.0  ;;  %v166_v24 = vmul.f32 0.0051020407, %v112_v20  ;;  %v108_v25 = vpop.xlane.xlu1 %107  ;;  %v252_v27 = vmul.f32 %v242_v17, %v1098_v40  ;;  %v207_v14 = vld [vmem:[%s1526_s0 + $0x10] sm:$0xff]  ;;  %v205_v20 = vld [vmem:[%s1526_s0] sm:$0xff] }
  0xb4   :  { %v875_v30 = vpop.eup %874  ;;  %v165_v34 = vmul.f32 0.0051020407, %v108_v25 }
  0xb5   :  { %v217_v35 = vadd.f32 0.001, %v197_v32  ;;  %v186_v36 = vsub.f32 %v166_v24, %v176_v18  ;;  %279 = vrot.lane.b32.xlu1 %v252_v27, %s889_s28  ;;  %v241_v41 = vmul.f32 %v875_v30, %v1159_v22 }
  0xb6   :  { %v185_v44 = vsub.f32 %v165_v34, %v175_v19  ;;  %v206_v19 = vld [vmem:[%s1526_s0 + $0x8] sm:$0xff] }
  0xb7   :  { %882 = vrsqrt.f32 %v217_v35  ;;  %v196_v48 = vmax.f32 %v186_v36, 0.0  ;;  %v251_v50 = vmul.f32 %v241_v41, %v1102_v49 }
  0xb8   :  { %v877_v51 = vpop.eup %876  ;;  %v195_v40 = vmax.f32 %v185_v44, 0.0 }
  0xb9   :  { %v216_v52 = vadd.f32 0.001, %v196_v48  ;;  %277 = vrot.lane.b32.xlu1 %v251_v50, %s889_s28  ;;  %v240_v54 = vmul.f32 %v877_v51, %v1167_v46 }
  0xba   :  { %v215_v56 = vadd.f32 0.001, %v195_v40 }
  0xbb   :  { %884 = vrsqrt.f32 %v216_v52  ;;  %v250_v60 = vmul.f32 %v240_v54, %v1108_v3 }
  0xbc   :  { %v879_v28 = vpop.eup %878  ;;  %886 = vrsqrt.f32 %v215_v56 }
  0xbd   :  { %275 = vrot.lane.b32.xlu0 %v250_v60, %s889_s28  ;;  %v239_v49 = vmul.f32 %v879_v28, %v209_v58 }
  0xbf   :  { %v249_v8 = vmul.f32 %v239_v49, %v1110_v12 }
  0xc0   :  { %v881_v9 = vpop.eup %880 }
  0xc1   :  { %273 = vrot.lane.b32.xlu1 %v249_v8, %s889_s28  ;;  %v238_v10 = vmul.f32 %v881_v9, %v208_v7 }
  0xc3   :  { %v248_v3 = vmul.f32 %v238_v10, %v1116_v26 }
  0xc4   :  { %v883_v16 = vpop.eup %882 }
  0xc5   :  { %271 = vrot.lane.b32.xlu0 %v248_v3, %s889_s28  ;;  %v237_v18 = vmul.f32 %v883_v16, %v207_v14 }
  0xc7   :  { %v247_v12 = vmul.f32 %v237_v18, %v1123_v38  ;;  %v890_v38 = vmov 1  }
  0xc8   :  { %v885_v32 = vpop.eup %884 }
  0xc9   :  { %v887_v24 = vpop.eup %886  ;;  %269 = vrot.lane.b32.xlu1 %v247_v12, %s889_s28  ;;  %v236_v25 = vmul.f32 %v885_v32, %v206_v19 }
  0xca   :  { %v235_v26 = vmul.f32 %v887_v24, %v205_v20 }
  0xcb   :  { %v246_v27 = vmul.f32 %v236_v25, %v1142_v59 }
  0xcc   :  { %v245_v30 = vmul.f32 %v235_v26, %v155_v13 }
  0xcd   :  { %267 = vrot.lane.b32.xlu0 %v246_v27, %s889_s28 }
  0xce   :  { %265 = vrot.lane.b32.xlu1 %v245_v30, %s889_s28 }
  0xd1   :  { %377 = vperm.xlu0 %864, %v1126_v42  }
  0xd2   :  { %372 = vperm.xlu1 %865, %v1138_v57  }
  0xd5   :  { %367 = vperm.xlu0 %864, %v242_v17  }
  0xd6   :  { %866 = vset.pattern.permute.xlu1 %v890_v38 }
  0xd9   :  { %362 = vperm.xlu0 %864, %v241_v41  }
  0xdd   :  { %357 = vperm.xlu0 %864, %v240_v54  }
  0xe1   :  { %352 = vperm.xlu0 %864, %v239_v49  }
  0xe5   :  { %347 = vperm.xlu0 %864, %v238_v10  }
  0xe9   :  { %342 = vperm.xlu0 %864, %v237_v18  }
  0xed   :  { %337 = vperm.xlu0 %864, %v236_v25  }
  0xf1   :  { %332 = vperm.xlu0 %864, %v235_v26  }
  0xf5   :  { %867 = vset.pattern.permute.xlu0 %v890_v38 }
 0x120   :  { %v284_v59 = vpop.permute.xlu0 %283 }
 0x121   :  { %v304_v13 = vsub.f32 %v1121_v33, %v284_v59 }
 0x123   :  { %447 = vperm.xlu1 %866, %v304_v13   ;;  %v282_v34 = vpop.permute.xlu1 %281 }
 0x124   :  { %v303_v42 = vsub.f32 %v1131_v43, %v282_v34 }
 0x127   :  { %442 = vperm.xlu1 %866, %v303_v42   ;;  %v280_v57 = vpop.permute.xlu1 %279 }
 0x128   :  { %v302_v17 = vsub.f32 %v1148_v62, %v280_v57 }
 0x12b   :  { %437 = vperm.xlu1 %866, %v302_v17   ;;  %v278_v35 = vpop.permute.xlu1 %277 }
 0x12c   :  { %v301_v36 = vsub.f32 %v1159_v22, %v278_v35  ;;  %v891_v22 = vmov 0.0  }
 0x12d   :  { %610 = vmatprep.mubr.f32.mxu0 %v891_v22  ;;  %688 = vmatprep.mubr.f32.mxu1 %v891_v22 }
 0x12f   :  { %432 = vperm.xlu1 %866, %v301_v36   ;;  %v276_v41 = vpop.permute.xlu0 %275 }
 0x130   :  { %v300_v44 = vsub.f32 %v1167_v46, %v276_v41 }
 0x133   :  { %427 = vperm.xlu1 %866, %v300_v44   ;;  %v274_v48 = vpop.permute.xlu1 %273 }
 0x134   :  { %v299_v50 = vsub.f32 %v209_v58, %v274_v48 }
 0x137   :  { %422 = vperm.xlu1 %866, %v299_v50   ;;  %v272_v33 = vpop.permute.xlu0 %271 }
 0x138   :  { %v298_v51 = vsub.f32 %v208_v7, %v272_v33 }
 0x13b   :  { %417 = vperm.xlu1 %866, %v298_v51   ;;  %v270_v43 = vpop.permute.xlu1 %269 }
 0x13c   :  { %v297_v40 = vsub.f32 %v207_v14, %v270_v43 }
 0x13f   :  { %412 = vperm.xlu1 %866, %v297_v40   ;;  %v268_v52 = vpop.permute.xlu0 %267 }
 0x140   :  { %v296_v62 = vsub.f32 %v206_v19, %v268_v52  ;;  %v266_v54 = vpop.permute.xlu1 %265 }
 0x141   :  { %v295_v56 = vsub.f32 %v205_v20, %v266_v54 }
 0x143   :  { %407 = vperm.xlu1 %866, %v296_v62   ;;  %402 = vperm.xlu0 %867, %v295_v56  }
 0x14c   :  { %v378_v46 = vpop.permute.xlu0 %377 }
 0x14d   :  { %v373_v28 = vpop.permute.xlu1 %372  ;;  %v398_v7 = vmul.f32 %v378_v46, %v915_v0  ;;  %v399_v8 = vmul.f32 %v378_v46, %v920_v1 }
 0x14e   :  { %v396_v3 = vmul.f32 %v373_v28, %v937_v5  ;;  %v397_v16 = vmul.f32 %v373_v28, %v942_v6  ;;  %v308_v28 = vld [vmem:[%s1527_s1 + $0x18] sm:$0xff] }
 0x150   :  { %v368_v58 = vpop.permute.xlu0 %367 }
 0x151   :  { %v394_v32 = vmul.f32 %v368_v58, %v925_v2  ;;  %v395_v0 = vmul.f32 %v368_v58, %v932_v4  ;;  %v307_v58 = vld [vmem:[%s1527_s1 + $0x10] sm:$0xff] }
 0x154   :  { %v363_v60 = vpop.permute.xlu0 %362 }
 0x155   :  { %v392_v25 = vmul.f32 %v363_v60, %v971_v21  ;;  %v393_v26 = vmul.f32 %v363_v60, %v960_v15  ;;  %v320_v60 = vld [vmem:[%s1527_s1 + $0x78] sm:$0xff] }
 0x158   :  { %v358_v49 = vpop.permute.xlu0 %357 }
 0x159   :  { %v390_v4 = vmul.f32 %v358_v49, %v989_v29  ;;  %v391_v38 = vmul.f32 %v358_v49, %v978_v23  ;;  %v321_v49 = vld [vmem:[%s1527_s1 + $0x80] sm:$0xff] }
 0x15c   :  { %v353_v18 = vpop.permute.xlu0 %352 }
 0x15d   :  { %v388_v15 = vmul.f32 %v353_v18, %v1007_v37  ;;  %v389_v42 = vmul.f32 %v353_v18, %v996_v31  ;;  %v325_v18 = vld [vmem:[%s1527_s1 + $0xa0] sm:$0xff] }
 0x160   :  { %v348_v6 = vpop.permute.xlu0 %347 }
 0x161   :  { %v386_v35 = vmul.f32 %v348_v6, %v1025_v45  ;;  %v387_v36 = vmul.f32 %v348_v6, %v1014_v39  ;;  %v317_v6 = vld [vmem:[%s1527_s1 + $0x60] sm:$0xff] }
 0x164   :  { %v343_v59 = vpop.permute.xlu0 %342 }
 0x165   :  { %v384_v31 = vmul.f32 %v343_v59, %v1043_v53  ;;  %v385_v48 = vmul.f32 %v343_v59, %v1032_v47 }
 0x168   :  { %v338_v23 = vpop.permute.xlu0 %337 }
 0x169   :  { %v382_v39 = vmul.f32 %v338_v23, %v1061_v61  ;;  %v383_v43 = vmul.f32 %v338_v23, %v1050_v55  ;;  %v305_v55 = vld [vmem:[%s1527_s1] sm:$0xff]  ;;  %v318_v61 = vld [vmem:[%s1527_s1 + $0x68] sm:$0xff] }
 0x16c   :  { %v333_v50 = vpop.permute.xlu0 %332 }
 0x16d   :  { %v381_v47 = vmul.f32 %v333_v50, %v1068_v63  ;;  %v380_v54 = vmul.f32 %v333_v50, %v1079_v11  ;;  %v306_v63 = vld [vmem:[%s1527_s1 + $0x8] sm:$0xff]  ;;  %v319_v11 = vld [vmem:[%s1527_s1 + $0x70] sm:$0xff] }
 0x19e   :  { %v448_v9 = vpop.permute.xlu1 %447 }
 0x19f   :  { %v469_v10 = vadd.f32 %v448_v9, %v399_v8  ;;  %v468_v14 = vadd.f32 %v448_v9, %v398_v7  ;;  %v309_v7 = vld [vmem:[%s1527_s1 + $0x20] sm:$0xff]  ;;  %v322_v8 = vld [vmem:[%s1527_s1 + $0x88] sm:$0xff] }
 0x1a0   :  { %v310_v9 = vld [vmem:[%s1527_s1 + $0x28] sm:$0xff] }
 0x1a1   :  { %558 = vmatprep.subr.mxu0 %v469_v10  ;;  %840 = vmatprep.subr.mxu1 %v469_v10  ;;  %v323_v10 = vld [vmem:[%s1527_s1 + $0x90] sm:$0xff] }
 0x1a2   :  { %559 = vmatpush1.msra.mxu0 %v468_v14  ;;  %850 = vmatpush1.msra.mxu1 %v468_v14  ;;  %v443_v19 = vpop.permute.xlu1 %442  ;;  %v311_v14 = vld [vmem:[%s1527_s1 + $0x30] sm:$0xff] }
 0x1a3   :  { %v466_v12 = vadd.f32 %v443_v19, %v396_v3  ;;  %v467_v20 = vadd.f32 %v443_v19, %v397_v16  ;;  %v324_v3 = vld [vmem:[%s1527_s1 + $0x98] sm:$0xff]  ;;  %v313_v19 = vld [vmem:[%s1527_s1 + $0x40] sm:$0xff] }
 0x1a4   :  { %v312_v16 = vld [vmem:[%s1527_s1 + $0x38] sm:$0xff] }
 0x1a5   :  { %560 = vmatprep.subr.mxu0 %v467_v20  ;;  %841 = vmatprep.subr.mxu1 %v467_v20  ;;  %v314_v20 = vld [vmem:[%s1527_s1 + $0x48] sm:$0xff] }
 0x1a6   :  { %561 = vmatpush1.msra.mxu0 %v466_v12  ;;  %851 = vmatpush1.msra.mxu1 %v466_v12  ;;  %v438_v1 = vpop.permute.xlu1 %437  ;;  %v326_v12 = vld [vmem:[%s1527_s1 + $0xa8] sm:$0xff] }
 0x1a7   :  { %v464_v5 = vadd.f32 %v438_v1, %v394_v32  ;;  %v465_v24 = vadd.f32 %v438_v1, %v395_v0  ;;  %v327_v32 = vld [vmem:[%s1527_s1 + $0xb0] sm:$0xff]  ;;  %v328_v1 = vld [vmem:[%s1527_s1 + $0xb8] sm:$0xff] }
 0x1a8   :  { %v315_v0 = vld [vmem:[%s1527_s1 + $0x50] sm:$0xff] }
 0x1a9   :  { %562 = vmatprep.subr.mxu0 %v465_v24  ;;  %842 = vmatprep.subr.mxu1 %v465_v24  ;;  %v329_v24 = vld [vmem:[%s1527_s1 + $0xc0] sm:$0xff] }
 0x1aa   :  { %563 = vmatpush1.msra.mxu0 %v464_v5  ;;  %852 = vmatpush1.msra.mxu1 %v464_v5  ;;  %v433_v27 = vpop.permute.xlu1 %432  ;;  %v316_v5 = vld [vmem:[%s1527_s1 + $0x58] sm:$0xff] }
 0x1ab   :  { %v462_v2 = vadd.f32 %v433_v27, %v392_v25  ;;  %v463_v30 = vadd.f32 %v433_v27, %v393_v26 }
 0x1ad   :  { %564 = vmatprep.subr.mxu0 %v463_v30  ;;  %843 = vmatprep.subr.mxu1 %v463_v30 }
 0x1ae   :  { %565 = vmatpush1.msra.mxu0 %v462_v2  ;;  %853 = vmatpush1.msra.mxu1 %v462_v2  ;;  %v428_v13 = vpop.permute.xlu1 %427 }
 0x1af   :  { %v460_v21 = vadd.f32 %v428_v13, %v390_v4  ;;  %v461_v34 = vadd.f32 %v428_v13, %v391_v38 }
 0x1b1   :  { %566 = vmatprep.subr.mxu0 %v461_v34  ;;  %844 = vmatprep.subr.mxu1 %v461_v34 }
 0x1b2   :  { %567 = vmatpush1.msra.mxu0 %v460_v21  ;;  %854 = vmatpush1.msra.mxu1 %v460_v21  ;;  %v423_v57 = vpop.permute.xlu1 %422 }
 0x1b3   :  { %v458_v29 = vadd.f32 %v423_v57, %v388_v15  ;;  %v459_v17 = vadd.f32 %v423_v57, %v389_v42 }
 0x1b5   :  { %568 = vmatprep.subr.mxu0 %v459_v17  ;;  %845 = vmatprep.subr.mxu1 %v459_v17 }
 0x1b6   :  { %569 = vmatpush1.msra.mxu0 %v458_v29  ;;  %855 = vmatpush1.msra.mxu1 %v458_v29  ;;  %v418_v41 = vpop.permute.xlu1 %417 }
 0x1b7   :  { %v456_v37 = vadd.f32 %v418_v41, %v386_v35  ;;  %v457_v44 = vadd.f32 %v418_v41, %v387_v36 }
 0x1b9   :  { %570 = vmatprep.subr.mxu0 %v457_v44  ;;  %846 = vmatprep.subr.mxu1 %v457_v44 }
 0x1ba   :  { %571 = vmatpush1.msra.mxu0 %v456_v37  ;;  %856 = vmatpush1.msra.mxu1 %v456_v37  ;;  %v413_v33 = vpop.permute.xlu1 %412 }
 0x1bb   :  { %v454_v45 = vadd.f32 %v413_v33, %v384_v31  ;;  %v455_v51 = vadd.f32 %v413_v33, %v385_v48 }
 0x1bd   :  { %572 = vmatprep.subr.mxu0 %v455_v51  ;;  %847 = vmatprep.subr.mxu1 %v455_v51 }
 0x1be   :  { %v403_v40 = vpop.permute.xlu0 %402  ;;  %573 = vmatpush1.msra.mxu0 %v454_v45  ;;  %857 = vmatpush1.msra.mxu1 %v454_v45  ;;  %v408_v53 = vpop.permute.xlu1 %407 }
 0x1bf   :  { %v452_v52 = vadd.f32 %v408_v53, %v382_v39  ;;  %v453_v62 = vadd.f32 %v408_v53, %v383_v43  ;;  %v451_v56 = vadd.f32 %v403_v40, %v381_v47  ;;  %v450_v46 = vadd.f32 %v403_v40, %v380_v54 }
 0x1c1   :  { %574 = vmatprep.subr.mxu0 %v453_v62  ;;  %848 = vmatprep.subr.mxu1 %v453_v62 }
 0x1c2   :  { %575 = vmatpush1.msra.mxu0 %v452_v52  ;;  %858 = vmatpush1.msra.mxu1 %v452_v52 }
 0x1c3   :  { %576 = vmatprep.subr.mxu0 %v451_v56  ;;  %849 = vmatprep.subr.mxu1 %v451_v56 }
 0x1c4   :  { %577 = vmatpush1.msra.mxu0 %v450_v46  ;;  %859 = vmatpush1.msra.mxu1 %v450_v46 }
 0x1c5   :  { %815 = vmatmul.mubr.msk.f32.vlgmr.msra.gmra.mxu0 %vm470_vm1, %v305_v55  ;;  %828 = vmatmul.mubr.msk.f32.vlgmr.msra.gmra.mxu1 %vm470_vm1, %v318_v61 }
 0x1c6   :  { %616 = vmatprep.mubr.f32.mxu0 %v891_v22  ;;  %694 = vmatprep.mubr.f32.mxu1 %v891_v22 }
 0x1c9   :  { %816 = vmatmul.mubr.msk.f32.gmra.mxu0 %vm470_vm1, %v306_v63  ;;  %829 = vmatmul.mubr.msk.f32.gmra.mxu1 %vm470_vm1, %v319_v11 }
 0x1ca   :  { %622 = vmatprep.mubr.f32.mxu0 %v891_v22  ;;  %700 = vmatprep.mubr.f32.mxu1 %v891_v22 }
 0x1cd   :  { %817 = vmatmul.mubr.msk.f32.gmra.mxu0 %vm470_vm1, %v307_v58  ;;  %830 = vmatmul.mubr.msk.f32.gmra.mxu1 %vm470_vm1, %v320_v60 }
 0x1ce   :  { %628 = vmatprep.mubr.f32.mxu0 %v891_v22  ;;  %706 = vmatprep.mubr.f32.mxu1 %v891_v22 }
 0x1d1   :  { %818 = vmatmul.mubr.msk.f32.gmra.mxu0 %vm470_vm1, %v308_v28  ;;  %831 = vmatmul.mubr.msk.f32.gmra.mxu1 %vm470_vm1, %v321_v49 }
 0x1d2   :  { %634 = vmatprep.mubr.f32.mxu0 %v891_v22  ;;  %712 = vmatprep.mubr.f32.mxu1 %v891_v22 }
 0x1d5   :  { %819 = vmatmul.mubr.msk.f32.gmra.mxu0 %vm470_vm1, %v309_v7  ;;  %832 = vmatmul.mubr.msk.f32.gmra.mxu1 %vm470_vm1, %v322_v8 }
 0x1d6   :  { %640 = vmatprep.mubr.f32.mxu0 %v891_v22  ;;  %718 = vmatprep.mubr.f32.mxu1 %v891_v22 }
 0x1d9   :  { %820 = vmatmul.mubr.msk.f32.gmra.mxu0 %vm470_vm1, %v310_v9  ;;  %833 = vmatmul.mubr.msk.f32.gmra.mxu1 %vm470_vm1, %v323_v10 }
 0x1da   :  { %646 = vmatprep.mubr.f32.mxu0 %v891_v22  ;;  %724 = vmatprep.mubr.f32.mxu1 %v891_v22 }
 0x1dd   :  { %821 = vmatmul.mubr.msk.f32.gmra.mxu0 %vm470_vm1, %v311_v14  ;;  %834 = vmatmul.mubr.msk.f32.gmra.mxu1 %vm470_vm1, %v324_v3 }
 0x1de   :  { %652 = vmatprep.mubr.f32.mxu0 %v891_v22  ;;  %730 = vmatprep.mubr.f32.mxu1 %v891_v22 }
 0x1e1   :  { %822 = vmatmul.mubr.msk.f32.gmra.mxu0 %vm470_vm1, %v312_v16  ;;  %835 = vmatmul.mubr.msk.f32.gmra.mxu1 %vm470_vm1, %v325_v18 }
 0x1e2   :  { %658 = vmatprep.mubr.f32.mxu0 %v891_v22  ;;  %736 = vmatprep.mubr.f32.mxu1 %v891_v22 }
 0x1e5   :  { %823 = vmatmul.mubr.msk.f32.gmra.mxu0 %vm470_vm1, %v313_v19  ;;  %836 = vmatmul.mubr.msk.f32.gmra.mxu1 %vm470_vm1, %v326_v12 }
 0x1e6   :  { %664 = vmatprep.mubr.f32.mxu0 %v891_v22  ;;  %742 = vmatprep.mubr.f32.mxu1 %v891_v22 }
 0x1e9   :  { %824 = vmatmul.mubr.msk.f32.gmra.mxu0 %vm470_vm1, %v314_v20  ;;  %837 = vmatmul.mubr.msk.f32.gmra.mxu1 %vm470_vm1, %v327_v32 }
 0x1ea   :  { %670 = vmatprep.mubr.f32.mxu0 %v891_v22  ;;  %748 = vmatprep.mubr.f32.mxu1 %v891_v22 }
 0x1ed   :  { %825 = vmatmul.mubr.msk.f32.gmra.mxu0 %vm470_vm1, %v315_v0  ;;  %838 = vmatmul.mubr.msk.f32.gmra.mxu1 %vm470_vm1, %v328_v1 }
 0x1ee   :  { %676 = vmatprep.mubr.f32.mxu0 %v891_v22  ;;  %754 = vmatprep.mubr.f32.mxu1 %v891_v22 }
 0x1f1   :  { %826 = vmatmul.mubr.msk.f32.gmra.mxu0 %vm470_vm1, %v316_v5  ;;  %839 = vmatmul.mubr.msk.f32.gmra.mxu1 %vm470_vm1, %v329_v24 }
 0x1f2   :  { %682 = vmatprep.mubr.f32.mxu0 %v891_v22 }
 0x1f5   :  { %827 = vmatmul.mubr.msk.f32.gmra.mxu0 %vm470_vm1, %v317_v6 }
 0x285   :  { %v612_v25 = vpop.f32.mrf.mxu0  ;;  %v690_v26 = vpop.f32.mrf.mxu1 }
 0x286   :  { %761 = vst [vmem:[%s1528_s3] sm:$0xff] %v612_v25  ;;  %787 = vst [vmem:[%s1528_s3 + $0xd0] sm:$0xff] %v690_v26 }
 0x287   :  { %v614_v27 = vpop.f32.mrf.mxu0  ;;  %v692_v2 = vpop.f32.mrf.mxu1 }
 0x288   :  { %762 = vst.msk [vmem:[%s1528_s3 + $0x8] sm:$0xff] %vm34_vm0, %v614_v27  ;;  %788 = vst.msk [vmem:[%s1528_s3 + $0xd8] sm:$0xff] %vm34_vm0, %v692_v2 }
 0x289   :  { %v618_v22 = vpop.f32.mrf.mxu0  ;;  %v696_v30 = vpop.f32.mrf.mxu1 }
 0x28a   :  { %763 = vst [vmem:[%s1528_s3 + $0x10] sm:$0xff] %v618_v22  ;;  %789 = vst [vmem:[%s1528_s3 + $0xe0] sm:$0xff] %v696_v30 }
 0x28b   :  { %v620_v4 = vpop.f32.mrf.mxu0  ;;  %v698_v38 = vpop.f32.mrf.mxu1 }
 0x28c   :  { %764 = vst.msk [vmem:[%s1528_s3 + $0x18] sm:$0xff] %vm34_vm0, %v620_v4  ;;  %790 = vst.msk [vmem:[%s1528_s3 + $0xe8] sm:$0xff] %vm34_vm0, %v698_v38 }
 0x28d   :  { %v624_v59 = vpop.f32.mrf.mxu0  ;;  %v702_v13 = vpop.f32.mrf.mxu1 }
 0x28e   :  { %765 = vst [vmem:[%s1528_s3 + $0x20] sm:$0xff] %v624_v59  ;;  %791 = vst [vmem:[%s1528_s3 + $0xf0] sm:$0xff] %v702_v13 }
 0x28f   :  { %v626_v21 = vpop.f32.mrf.mxu0  ;;  %v704_v34 = vpop.f32.mrf.mxu1 }
 0x290   :  { %766 = vst.msk [vmem:[%s1528_s3 + $0x28] sm:$0xff] %vm34_vm0, %v626_v21  ;;  %792 = vst.msk [vmem:[%s1528_s3 + $0xf8] sm:$0xff] %vm34_vm0, %v704_v34 }
 0x291   :  { %v630_v15 = vpop.f32.mrf.mxu0  ;;  %v708_v42 = vpop.f32.mrf.mxu1 }
 0x292   :  { %767 = vst [vmem:[%s1528_s3 + $0x30] sm:$0xff] %v630_v15  ;;  %793 = vst [vmem:[%s1528_s3 + $0x100] sm:$0xff] %v708_v42 }
 0x293   :  { %v632_v57 = vpop.f32.mrf.mxu0  ;;  %v710_v29 = vpop.f32.mrf.mxu1 }
 0x294   :  { %768 = vst.msk [vmem:[%s1528_s3 + $0x38] sm:$0xff] %vm34_vm0, %v632_v57  ;;  %794 = vst.msk [vmem:[%s1528_s3 + $0x108] sm:$0xff] %vm34_vm0, %v710_v29 }
 0x295   :  { %v636_v17 = vpop.f32.mrf.mxu0  ;;  %v714_v23 = vpop.f32.mrf.mxu1 }
 0x296   :  { %769 = vst [vmem:[%s1528_s3 + $0x40] sm:$0xff] %v636_v17  ;;  %795 = vst [vmem:[%s1528_s3 + $0x110] sm:$0xff] %v714_v23 }
 0x297   :  { %v638_v35 = vpop.f32.mrf.mxu0  ;;  %v716_v36 = vpop.f32.mrf.mxu1 }
 0x298   :  { %770 = vst.msk [vmem:[%s1528_s3 + $0x48] sm:$0xff] %vm34_vm0, %v638_v35  ;;  %796 = vst.msk [vmem:[%s1528_s3 + $0x118] sm:$0xff] %vm34_vm0, %v716_v36 }
 0x299   :  { %v642_v41 = vpop.f32.mrf.mxu0  ;;  %v720_v37 = vpop.f32.mrf.mxu1 }
 0x29a   :  { %771 = vst [vmem:[%s1528_s3 + $0x50] sm:$0xff] %v642_v41  ;;  %797 = vst [vmem:[%s1528_s3 + $0x120] sm:$0xff] %v720_v37 }
 0x29b   :  { %v644_v44 = vpop.f32.mrf.mxu0  ;;  %v722_v31 = vpop.f32.mrf.mxu1 }
 0x29c   :  { %772 = vst.msk [vmem:[%s1528_s3 + $0x58] sm:$0xff] %vm34_vm0, %v644_v44  ;;  %798 = vst.msk [vmem:[%s1528_s3 + $0x128] sm:$0xff] %vm34_vm0, %v722_v31 }
 0x29d   :  { %v648_v48 = vpop.f32.mrf.mxu0  ;;  %v726_v50 = vpop.f32.mrf.mxu1 }
 0x29e   :  { %773 = vst [vmem:[%s1528_s3 + $0x60] sm:$0xff] %v648_v48  ;;  %799 = vst [vmem:[%s1528_s3 + $0x130] sm:$0xff] %v726_v50 }
 0x29f   :  { %v650_v33 = vpop.f32.mrf.mxu0  ;;  %v728_v45 = vpop.f32.mrf.mxu1 }
 0x2a0   :  { %774 = vst.msk [vmem:[%s1528_s3 + $0x68] sm:$0xff] %vm34_vm0, %v650_v33  ;;  %800 = vst.msk [vmem:[%s1528_s3 + $0x138] sm:$0xff] %vm34_vm0, %v728_v45 }
 0x2a1   :  { %v654_v51 = vpop.f32.mrf.mxu0  ;;  %v732_v39 = vpop.f32.mrf.mxu1 }
 0x2a2   :  { %775 = vst [vmem:[%s1528_s3 + $0x70] sm:$0xff] %v654_v51  ;;  %801 = vst [vmem:[%s1528_s3 + $0x140] sm:$0xff] %v732_v39 }
 0x2a3   :  { %v656_v43 = vpop.f32.mrf.mxu0  ;;  %v734_v40 = vpop.f32.mrf.mxu1 }
 0x2a4   :  { %776 = vst.msk [vmem:[%s1528_s3 + $0x78] sm:$0xff] %vm34_vm0, %v656_v43  ;;  %802 = vst.msk [vmem:[%s1528_s3 + $0x148] sm:$0xff] %vm34_vm0, %v734_v40 }
 0x2a5   :  { %v660_v53 = vpop.f32.mrf.mxu0  ;;  %v738_v47 = vpop.f32.mrf.mxu1 }
 0x2a6   :  { %777 = vst [vmem:[%s1528_s3 + $0x80] sm:$0xff] %v660_v53  ;;  %803 = vst [vmem:[%s1528_s3 + $0x150] sm:$0xff] %v738_v47 }
 0x2a7   :  { %v662_v52 = vpop.f32.mrf.mxu0  ;;  %v740_v62 = vpop.f32.mrf.mxu1 }
 0x2a8   :  { %778 = vst.msk [vmem:[%s1528_s3 + $0x88] sm:$0xff] %vm34_vm0, %v662_v52  ;;  %804 = vst.msk [vmem:[%s1528_s3 + $0x158] sm:$0xff] %vm34_vm0, %v740_v62 }
 0x2a9   :  { %v666_v54 = vpop.f32.mrf.mxu0  ;;  %v744_v56 = vpop.f32.mrf.mxu1 }
 0x2aa   :  { %779 = vst [vmem:[%s1528_s3 + $0x90] sm:$0xff] %v666_v54  ;;  %805 = vst [vmem:[%s1528_s3 + $0x160] sm:$0xff] %v744_v56 }
 0x2ab   :  { %v668_v46 = vpop.f32.mrf.mxu0  ;;  %v746_v55 = vpop.f32.mrf.mxu1 }
 0x2ac   :  { %780 = vst.msk [vmem:[%s1528_s3 + $0x98] sm:$0xff] %vm34_vm0, %v668_v46  ;;  %806 = vst.msk [vmem:[%s1528_s3 + $0x168] sm:$0xff] %vm34_vm0, %v746_v55 }
 0x2ad   :  { %v672_v61 = vpop.f32.mrf.mxu0  ;;  %v750_v63 = vpop.f32.mrf.mxu1 }
 0x2ae   :  { %781 = vst [vmem:[%s1528_s3 + $0xa0] sm:$0xff] %v672_v61  ;;  %807 = vst [vmem:[%s1528_s3 + $0x170] sm:$0xff] %v750_v63 }
 0x2af   :  { %v674_v11 = vpop.f32.mrf.mxu0  ;;  %v752_v58 = vpop.f32.mrf.mxu1 }
 0x2b0   :  { %782 = vst.msk [vmem:[%s1528_s3 + $0xa8] sm:$0xff] %vm34_vm0, %v674_v11  ;;  %808 = vst.msk [vmem:[%s1528_s3 + $0x178] sm:$0xff] %vm34_vm0, %v752_v58 }
 0x2b1   :  { %v678_v60 = vpop.f32.mrf.mxu0  ;;  %v756_v28 = vpop.f32.mrf.mxu1 }
 0x2b2   :  { %783 = vst [vmem:[%s1528_s3 + $0xb0] sm:$0xff] %v678_v60  ;;  %809 = vst [vmem:[%s1528_s3 + $0x180] sm:$0xff] %v756_v28 }
 0x2b3   :  { %v680_v49 = vpop.f32.mrf.mxu0  ;;  %v758_v7 = vpop.f32.mrf.mxu1 }
 0x2b4   :  { %784 = vst.msk [vmem:[%s1528_s3 + $0xb8] sm:$0xff] %vm34_vm0, %v680_v49  ;;  %810 = vst.msk [vmem:[%s1528_s3 + $0x188] sm:$0xff] %vm34_vm0, %v758_v7 }
 0x2b5   :  { %v684_v8 = vpop.f32.mrf.mxu0 }
 0x2b6   :  { %785 = vst [vmem:[%s1528_s3 + $0xc0] sm:$0xff] %v684_v8 }
 0x2b7   :  { %v686_v9 = vpop.f32.mrf.mxu0 }
 0x2b8   :  { %786 = vst.msk [vmem:[%s1528_s3 + $0xc8] sm:$0xff] %vm34_vm0, %v686_v9 }

</bundles_post_ra>
